<compile_context>
chip_gen: v6e
topology: v6e:2x2x1
jax: 0.10.0
libtpu: 0.0.40
codegen_flags: <defaults>
</compile_context>

<pallas_src>
import functools

import jax
import jax.numpy as jnp
from jax.experimental import pallas as pl
from jax.experimental.pallas import tpu as pltpu


# ----------------------- Tiled linear: y = x @ W + b ----------------------- #
def _linear_kernel(x_ref, w_ref, b_ref, o_ref, acc_ref):
    k = pl.program_id(2)

    @pl.when(k == 0)
    def _():
        acc_ref[...] = jnp.zeros_like(acc_ref)

    acc_ref[...] += jnp.dot(
        x_ref[...], w_ref[...], preferred_element_type=jnp.float32
    )

    @pl.when(k == pl.num_programs(2) - 1)
    def _():
        o_ref[...] = (acc_ref[...] + b_ref[...].astype(jnp.float32)).astype(o_ref.dtype)


def _pick_tile(dim, pref, align):
    """Largest tile <= pref that divides dim and is `align`-aligned; else full dim."""
    if dim <= pref:
        return dim
    for cand in range(pref, 0, -align):
        if dim % cand == 0:
            return cand
    return dim


def linear(x, w, b, *, tm=512, tn=512, tk=512):
    """x: (M, K), w: (K, N), b: (1, N) -> (M, N); f32 MXU accumulation."""
    M, K = x.shape
    N = w.shape[1]
    tm = _pick_tile(M, tm, 8)
    tn = _pick_tile(N, tn, 128)
    tk = _pick_tile(K, tk, 128)
    grid = (M // tm, N // tn, K // tk)
    return pl.pallas_call(
        _linear_kernel,
        out_shape=jax.ShapeDtypeStruct((M, N), x.dtype),
        grid=grid,
        in_specs=[
            pl.BlockSpec((tm, tk), lambda i, j, k: (i, k)),
            pl.BlockSpec((tk, tn), lambda i, j, k: (k, j)),
            pl.BlockSpec((1, tn), lambda i, j, k: (0, j)),
        ],
        out_specs=pl.BlockSpec((tm, tn), lambda i, j, k: (i, j)),
        scratch_shapes=[pltpu.VMEM((tm, tn), jnp.float32)],
        compiler_params=pltpu.CompilerParams(
            dimension_semantics=("parallel", "parallel", "arbitrary")
        ),
    )(x, w, b)


# ------------------- Attention core: all heads per batch step ------------------- #
def _attn_kernel(q_ref, k_ref, v_ref, attn_ref, dist_ref, *, inv_scale, approx):
    q = q_ref[0]  # (H, Lq, Dh)
    k = k_ref[0]  # (H, Lk, Dh)
    v = v_ref[0]  # (H, Lk, Dh)

    # All heads at once; contract the trailing Dh dims directly (no k.T transpose).
    s = jax.lax.dot_general(
        q, k,
        dimension_numbers=(((2,), (2,)), ((0,), (0,))),
        preferred_element_type=jnp.float32,
    ) * inv_scale                                            # (H, Lq, Lk)

    # softmax over the last dim; normalization via reciprocal (EUP) + multiply.
    m = jnp.max(s, axis=-1, keepdims=True)
    e = jnp.exp(s - m)
    denom = jnp.sum(e, axis=-1, keepdims=True)
    p = e * pl.reciprocal(denom, approx=approx)

    dist_ref[0] = p.astype(dist_ref.dtype)

    pv = jax.lax.dot_general(
        p.astype(v.dtype), v,
        dimension_numbers=(((2,), (1,)), ((0,), (0,))),
        preferred_element_type=jnp.float32,
    )                                                        # (H, Lq, Dh)
    attn_ref[0] = pv.astype(attn_ref.dtype)


def attention_core(q, k, v, dim_head, *, approx_softmax=True):
    """q: (B, H, Lq, Dh), k/v: (B, H, Lk, Dh) -> (attn (B,H,Lq,Dh), dist (B,H,Lq,Lk))."""
    B, H, Lq, Dh = q.shape
    Lk = k.shape[2]
    # PyTorch precedence bug reproduced: dim_head ** 1 / 2 == dim_head / 2.
    inv_scale = 1.0 / (dim_head ** 1 / 2)
    kernel = functools.partial(_attn_kernel, inv_scale=inv_scale, approx=approx_softmax)
    # NOTE: for long sequences (esp. v7x's 64 MiB VMEM) an 'arbitrary' Lk grid axis with
    # flash-style online-softmax scratch would bound VMEM; full-Lk blocks fit these sizes.
    return pl.pallas_call(
        kernel,
        out_shape=(
            jax.ShapeDtypeStruct((B, H, Lq, Dh), q.dtype),
            jax.ShapeDtypeStruct((B, H, Lq, Lk), jnp.float32),
        ),
        grid=(B,),
        in_specs=[
            pl.BlockSpec((1, H, Lq, Dh), lambda b: (b, 0, 0, 0)),
            pl.BlockSpec((1, H, Lk, Dh), lambda b: (b, 0, 0, 0)),
            pl.BlockSpec((1, H, Lk, Dh), lambda b: (b, 0, 0, 0)),
        ],
        out_specs=(
            pl.BlockSpec((1, H, Lq, Dh), lambda b: (b, 0, 0, 0)),
            pl.BlockSpec((1, H, Lq, Lk), lambda b: (b, 0, 0, 0)),
        ),
        compiler_params=pltpu.CompilerParams(dimension_semantics=("parallel",)),
    )(q, k, v)


# ------------------------------ Module forward -------------------------------- #
def dp_attention_forward(params, Q, K, V, num_head, *, approx_softmax=True):
    B, len_Q, D = Q.shape
    len_K = K.shape[1]
    len_V = V.shape[1]
    dim_head = D // num_head

    if Q is K and K is V:
        # Self-attention: fuse the three projections into a single (D, 3D) matmul
        # (one HBM read of the activations, one kernel launch).
        w_qkv = jnp.concatenate([params["wq"], params["wk"], params["wv"]], axis=1)
        b_qkv = jnp.concatenate([params["bq"], params["bk"], params["bv"]], axis=1)
        qkv = linear(Q.reshape(B * len_Q, D), w_qkv, b_qkv)          # (B*L, 3D)
        q, k, v = jnp.split(qkv, 3, axis=-1)
        q = q.reshape(B, len_Q, D)
        k = k.reshape(B, len_K, D)
        v = v.reshape(B, len_V, D)
    else:
        q = linear(Q.reshape(B * len_Q, D), params["wq"], params["bq"]).reshape(B, len_Q, D)
        k = linear(K.reshape(B * len_K, D), params["wk"], params["bk"]).reshape(B, len_K, D)
        v = linear(V.reshape(B * len_V, D), params["wv"], params["bv"]).reshape(B, len_V, D)

    # exact PyTorch reshape semantics (row-major, no head transpose)
    q = q.reshape(B, num_head, len_Q, dim_head)
    k = k.reshape(B, num_head, len_K, dim_head)
    v = v.reshape(B, num_head, len_V, dim_head)

    attn, attn_distribution = attention_core(
        q, k, v, dim_head, approx_softmax=approx_softmax
    )

    # Free row-major view back to (B*L, D) (matches PyTorch's reshape bit-for-bit);
    # the output projection then consumes a lane-dense (B*L, D) slab.
    attn = attn.reshape(B, len_Q, num_head * dim_head).reshape(B * len_Q, D)
    out = linear(attn, params["wo"], params["bo"]).reshape(B, len_Q, D)
    return out, attn_distribution


# ------------------------------- Reference (JAX) ------------------------------ #
def dp_attention_reference(params, Q, K, V, num_head):
    B, len_Q, D = Q.shape
    len_K = K.shape[1]
    dim_head = D // num_head
    q = Q.reshape(-1, D) @ params["wq"] + params["bq"]
    k = K.reshape(-1, D) @ params["wk"] + params["bk"]
    v = V.reshape(-1, D) @ params["wv"] + params["bv"]
    q = q.reshape(B, num_head, len_Q, dim_head)
    k = k.reshape(B, num_head, len_K, dim_head)
    v = v.reshape(B, num_head, len_K, dim_head)
    s = jnp.einsum("bhqd,bhkd->bhqk", q, k) / (dim_head ** 1 / 2)
    p = jax.nn.softmax(s, axis=-1)
    a = jnp.einsum("bhqk,bhkd->bhqd", p, v).reshape(B, len_Q, D)
    o = (a.reshape(-1, D) @ params["wo"] + params["bo"]).reshape(B, len_Q, D)
    return o, p


# ----------------------------------- Main -------------------------------------- #
if __name__ == "__main__":
    B, L, dim_model, num_head = 2, 8, 32, 4

    key = jax.random.PRNGKey(0)
    ks = jax.random.split(key, 12)
    scale = 1.0 / jnp.sqrt(dim_model)

    def u(k, shape):
        return jax.random.uniform(k, shape, jnp.float32, -scale, scale)

    params = {
        "wq": u(ks[0], (dim_model, dim_model)), "bq": u(ks[1], (1, dim_model)),
        "wk": u(ks[2], (dim_model, dim_model)), "bk": u(ks[3], (1, dim_model)),
        "wv": u(ks[4], (dim_model, dim_model)), "bv": u(ks[5], (1, dim_model)),
        "wo": u(ks[6], (dim_model, dim_model)), "bo": u(ks[7], (1, dim_model)),
    }

    X = jax.random.normal(ks[8], (B, L, dim_model), jnp.float32)
    Q_in = jax.random.normal(ks[9], (B, L, dim_model), jnp.float32)
    K_in = jax.random.normal(ks[10], (B, L, dim_model), jnp.float32)
    V_in = jax.random.normal(ks[11], (B, L, dim_model), jnp.float32)

    # 1) Self-attention (fused QKV projection path), exact reciprocal -> strict check.
    out, dist = dp_attention_forward(params, X, X, X, num_head, approx_softmax=False)
    jax.block_until_ready((out, dist))
    ref_out, ref_dist = dp_attention_reference(params, X, X, X, num_head)
    assert out.shape == (B, L, dim_model)
    assert dist.shape == (B, num_head, L, L)
    assert jnp.allclose(out, ref_out, atol=1e-4, rtol=1e-4)
    assert jnp.allclose(dist, ref_dist, atol=1e-5, rtol=1e-5)

    # 2) Same inputs with the EUP approx-reciprocal softmax -> looser sanity check.
    out_a, dist_a = dp_attention_forward(params, X, X, X, num_head, approx_softmax=True)
    jax.block_until_ready((out_a, dist_a))
    assert jnp.allclose(out_a, ref_out, atol=2e-2, rtol=2e-2)
    assert jnp.allclose(dist_a, ref_dist, atol=2e-2, rtol=2e-2)

    # 3) Distinct Q/K/V (separate projection path), exact reciprocal -> strict check.
    out_c, dist_c = dp_attention_forward(
        params, Q_in, K_in, V_in, num_head, approx_softmax=False
    )
    jax.block_until_ready((out_c, dist_c))
    ref_out_c, ref_dist_c = dp_attention_reference(params, Q_in, K_in, V_in, num_head)
    assert jnp.allclose(out_c, ref_out_c, atol=1e-4, rtol=1e-4)
    assert jnp.allclose(dist_c, ref_dist_c, atol=1e-5, rtol=1e-5)

    print("KERNEL_OK")
</pallas_src>

<mosaic_0001>
module attributes {stable_mosaic.version = 11 : i64} {
  func.func @_linear_kernel(%arg0: i32, %arg1: i32, %arg2: i32, %arg3: memref<16x32xf32, #tpu.memory_space<vmem>>, %arg4: memref<32x96xf32, #tpu.memory_space<vmem>>, %arg5: memref<1x96xf32, #tpu.memory_space<vmem>>, %arg6: memref<16x96xf32, #tpu.memory_space<vmem>>, %arg7: memref<16x96xf32, #tpu.memory_space<vmem>>) attributes {dimension_semantics = [#tpu.dimension_semantics<parallel>, #tpu.dimension_semantics<parallel>, #tpu.dimension_semantics<arbitrary>], iteration_bounds = array<i64: 1, 1, 1>, scalar_prefetch = 0 : i64, scratch_operands = 1 : i64, tpu.core_type = #tpu.core_type<tc>, window_params = [{transform_indices = @transform_0, window_bounds = array<i64: 16, 32>}, {transform_indices = @transform_1, window_bounds = array<i64: 32, 96>}, {transform_indices = @transform_2, window_bounds = array<i64: 1, 96>}, {transform_indices = @transform_3, window_bounds = array<i64: 16, 96>}]} {
    %c0_i32 = arith.constant 0 : i32
    %0 = arith.cmpi eq, %arg2, %c0_i32 : i32
    %1 = arith.extui %0 : i1 to i32
    %c0_i32_0 = arith.constant 0 : i32
    %2 = arith.cmpi ne, %1, %c0_i32_0 : i32
    scf.if %2 {
      %cst_10 = arith.constant 0.000000e+00 : f32
      %12 = vector.broadcast %cst_10 : f32 to vector<16x96xf32>
      %c0_11 = arith.constant 0 : index
      %c0_12 = arith.constant 0 : index
      %13 = vector.load %arg7[%c0_11, %c0_12] : memref<16x96xf32, #tpu.memory_space<vmem>>, vector<16x96xf32>
      tpu.vector_store %arg7[%c0_11, %c0_12], %12 {strides = array<i32>} : memref<16x96xf32, #tpu.memory_space<vmem>>, vector<16x96xf32>,
    } else {
    }
    %c0 = arith.constant 0 : index
    %c0_1 = arith.constant 0 : index
    %3 = vector.load %arg7[%c0, %c0_1] : memref<16x96xf32, #tpu.memory_space<vmem>>, vector<16x96xf32>
    %c0_2 = arith.constant 0 : index
    %c0_3 = arith.constant 0 : index
    %4 = vector.load %arg3[%c0_2, %c0_3] : memref<16x32xf32, #tpu.memory_space<vmem>>, vector<16x32xf32>
    %c0_4 = arith.constant 0 : index
    %c0_5 = arith.constant 0 : index
    %5 = vector.load %arg4[%c0_4, %c0_5] : memref<32x96xf32, #tpu.memory_space<vmem>>, vector<32x96xf32>
    %cst = arith.constant dense<0.000000e+00> : vector<16x96xf32>
    %6 = tpu.matmul %4, %5, %cst {dimension_numbers = #tpu.dot_dimension_numbers<[1], [0], [0], [1], [0, 0, 1, 1], [], []>} : vector<16x32xf32>, vector<32x96xf32>, vector<16x96xf32> -> vector<16x96xf32>
    %7 = arith.addf %3, %6 : vector<16x96xf32>
    %c0_6 = arith.constant 0 : index
    %c0_7 = arith.constant 0 : index
    %8 = vector.load %arg7[%c0_6, %c0_7] : memref<16x96xf32, #tpu.memory_space<vmem>>, vector<16x96xf32>
    tpu.vector_store %arg7[%c0_6, %c0_7], %7 {strides = array<i32>} : memref<16x96xf32, #tpu.memory_space<vmem>>, vector<16x96xf32>,
    %c0_i32_8 = arith.constant 0 : i32
    %9 = arith.cmpi eq, %arg2, %c0_i32_8 : i32
    %10 = arith.extui %9 : i1 to i32
    %c0_i32_9 = arith.constant 0 : i32
    %11 = arith.cmpi ne, %10, %c0_i32_9 : i32
    scf.if %11 {
      %c0_10 = arith.constant 0 : index
      %c0_11 = arith.constant 0 : index
      %12 = vector.load %arg7[%c0_10, %c0_11] : memref<16x96xf32, #tpu.memory_space<vmem>>, vector<16x96xf32>
      %c0_12 = arith.constant 0 : index
      %c0_13 = arith.constant 0 : index
      %13 = vector.load %arg5[%c0_12, %c0_13] : memref<1x96xf32, #tpu.memory_space<vmem>>, vector<1x96xf32>
      %14 = vector.broadcast %13 : vector<1x96xf32> to vector<16x96xf32>
      %15 = arith.addf %12, %14 : vector<16x96xf32>
      %c0_14 = arith.constant 0 : index
      %c0_15 = arith.constant 0 : index
      %16 = vector.load %arg6[%c0_14, %c0_15] : memref<16x96xf32, #tpu.memory_space<vmem>>, vector<16x96xf32>
      tpu.vector_store %arg6[%c0_14, %c0_15], %15 {strides = array<i32>} : memref<16x96xf32, #tpu.memory_space<vmem>>, vector<16x96xf32>,
    } else {
    }
    return
  }
  func.func @transform_0(%arg0: i32, %arg1: i32, %arg2: i32) -> (i32, i32) {
    %c0_i32 = arith.constant 0 : i32
    return %arg0, %arg2 : i32, i32
  }
  func.func @transform_1(%arg0: i32, %arg1: i32, %arg2: i32) -> (i32, i32) {
    %c0_i32 = arith.constant 0 : i32
    return %arg2, %arg1 : i32, i32
  }
  func.func @transform_2(%arg0: i32, %arg1: i32, %arg2: i32) -> (i32, i32) {
    %c0_i32 = arith.constant 0 : i32
    %c0_i32_0 = arith.constant 0 : i32
    return %c0_i32, %arg1 : i32, i32
  }
  func.func @transform_3(%arg0: i32, %arg1: i32, %arg2: i32) -> (i32, i32) {
    %c0_i32 = arith.constant 0 : i32
    return %arg0, %arg1 : i32, i32
  }
}

</mosaic_0001>

<bundles_post_ra>
// kernel: tpu_custom_call.1
= control target key start
LH: loop header
LB: loop body
LE: loop exit
PB: predicated region body
PF: predicated region fallthrough
CT: control target
= control target key end

     0   :  { %8 = vsyncpa [#allocation4], 0  ;;  %s326_s0 = inlined_call_operand.hbm [shape: f32[16,32], index: 0, kind: input, shape index: {}]   ;;  %s327_s1 = inlined_call_operand.hbm [shape: f32[32,96], index: 1, kind: input, shape index: {}]   ;;  %s328_s2 = inlined_call_operand.vmem [shape: f32[1,96], index: 2, kind: input, shape index: {}]   ;;  %s329_s3 = inlined_call_operand.hbm [shape: f32[16,96], index: 3, kind: output, shape index: {}]  }
   0x1   :  { %9 = vsyncpa [#allocation7], 0 }
   0x2   :  { %10 = vsyncpa [#allocation5], 0  ;;  %s271_s12 = smov [#allocation3]  }
   0x3   :  { %s16_s13 = sshll.u32 %s271_s12, 4  ;;  %s17_s13 = int_to_ptr.vmem [resolvable:$true] %s16_s13 }
   0x4   :  { %s213_s14 = scalar_lea.vmem %s17_s13, 256  ;;  %p218_p1 = scmp.lt.s32.totalorder %s17_s13, %s17_s13 }
   0x5   :  { %p214_p0 = scmp.ne.s32.totalorder %s17_s13, %s213_s14  ;;  %p219_p2 = scmp.lt.s32.totalorder %s213_s14, %s213_s14 }
   0x7   :  { %p220_p3 = por %p219_p2, %p218_p1 }
   0x9   :  { %p221_p4 = pnand %p220_p3, %p214_p0 }
   0xb   :  { %224 = shalt.err (!%p221_p4)
}
   0xc   :  { %s272_s15 = smov 128   ;;  %s273_s16 = smov 8  }
   0xd   :  { %22 = dma.hbm_to_vmem [thread:$0]  %s326_s0, 256, %s17_s13, [#allocation4], %s272_s15, %s272_s15, %s273_s16  }
   0xe   :  { %s274_s19 = smov [#allocation6]  }
   0xf   :  { %s28_s20 = sshll.u32 %s274_s19, 4  ;;  %s29_s20 = int_to_ptr.vmem [resolvable:$true] %s28_s20 }
  0x10   :  { %s233_s21 = scalar_lea.vmem %s29_s20, 512  ;;  %p238_p6 = scmp.lt.s32.totalorder %s29_s20, %s29_s20 }
  0x11   :  { %p234_p5 = scmp.ne.s32.totalorder %s29_s20, %s233_s21  ;;  %p239_p7 = scmp.lt.s32.totalorder %s233_s21, %s233_s21 }
  0x13   :  { %p240_p8 = por %p239_p7, %p238_p6 }
  0x15   :  { %p241_p9 = pnand %p240_p8, %p234_p5 }
  0x17   :  { %244 = shalt.err (!%p241_p9)
}
  0x18   :  { %34 = dma.hbm_to_vmem [thread:$0]  %s327_s1, 512, %s29_s20, [#allocation7], %s272_s15, %s272_s15, %s273_s16  }
  0x19   :  { %265 = dma.done.wait [#allocation4], 256  }
  0x1a   :  { %266 = vsyncadd [#allocation4], 4294967040 }
  0x1b   :  { %267 = dma.done.wait [#allocation7], 512  }
  0x1c   :  { %268 = vsyncadd [#allocation7], 4294966784  ;;  %vm47_vm0 = vcmask 785408   ;;  %v275_v0 = vmov 0.0   ;;  %vm58_vm1 = vcmask 261120   ;;  %v57_v1 = vld [vmem:[#allocation6 + $0x18] sm:$0xff] }
  0x1d   :  { %49 = vst.msk [vmem:[#allocation2 + $0x8] sm:$0xff] %vm47_vm0, %v275_v0  ;;  %48 = vst.msk [vmem:[#allocation2] sm:$0xff] %vm47_vm0, %v275_v0  ;;  %v56_v2 = vld [vmem:[#allocation6 + $0x10] sm:$0xff]  ;;  %188 = vmatprep.subr.mxu0 %v57_v1  ;;  %v55_v4 = vld [vmem:[#allocation6 + $0x8] sm:$0xff]  ;;  %s276_s24 = smov [#allocation8]  }
  0x1e   :  { %v52_v3 = vld [vmem:[#allocation3] sm:$0xff]  ;;  %189 = vmatpush3.msra.mxu0 %v57_v1  ;;  %v54_v5 = vld [vmem:[#allocation6] sm:$0xff]  ;;  %v53_v6 = vld [vmem:[#allocation3 + $0x8] sm:$0xff]  ;;  %s166_s25 = sshll.u32 %s276_s24, 4  ;;  %s167_s25 = int_to_ptr.vmem [resolvable:$true] %s166_s25 }
  0x1f   :  { %196 = vmatprep.mubr.msk.f32.mxu0 %vm58_vm1, %v52_v3  ;;  %190 = vmatprep.subr.mxu0 %v56_v2  ;;  %v181_v13 = vld [vmem:[%s328_s2] ss:$0 sm:$0xff]  ;;  %s245_s26 = scalar_lea.vmem %s167_s25, 256  ;;  %p250_p11 = scmp.lt.s32.totalorder %s167_s25, %s167_s25 }
  0x20   :  { %191 = vmatpush3.msra.mxu0 %v56_v2  ;;  %p246_p10 = scmp.ne.s32.totalorder %s167_s25, %s245_s26  ;;  %p251_p12 = scmp.lt.s32.totalorder %s245_s26, %s245_s26 }
  0x21   :  { %192 = vmatprep.subr.mxu0 %v55_v4 }
  0x22   :  { %193 = vmatpush3.msra.mxu0 %v55_v4  ;;  %p252_p13 = por %p251_p12, %p250_p11 }
  0x23   :  { %194 = vmatprep.subr.mxu0 %v54_v5 }
  0x24   :  { %195 = vmatpush3.msra.mxu0 %v54_v5  ;;  %v51_v7 = vld [vmem:[#allocation2 + $0x8] sm:$0xff]  ;;  %v50_v9 = vld [vmem:[#allocation2] sm:$0xff]  ;;  %p253_p0 = pnand %p252_p13, %p246_p10 }
  0x25   :  { %197 = vmatmul.mubr.msk.f32.vlgmr.msra.gmra.mxu0 %vm58_vm1, %v53_v6 }
  0xe5   :  { %v198_v8 = vpop.f32.mrf.mxu0 }
  0xe6   :  { %v141_v10 = vadd.f32 %v198_v8, %v51_v7 }
  0xe7   :  { %v131_v11 = vpop.f32.mrf.mxu0 }
  0xe8   :  { %144 = vst.msk [vmem:[#allocation2 + $0x8] sm:$0xff] %vm47_vm0, %v141_v10  ;;  %v140_v12 = vadd.f32 %v131_v11, %v50_v9 }
  0xea   :  { %143 = vst.msk [vmem:[#allocation2] sm:$0xff] %vm47_vm0, %v140_v12 }
  0xef   :  { %v149_v14 = vld [vmem:[#allocation2 + $0x8] sm:$0xff] }
  0xf0   :  { %v158_v15 = vadd.f32 %v181_v13, %v149_v14 }
  0xf1   :  { %v148_v16 = vld [vmem:[#allocation2] sm:$0xff] }
  0xf2   :  { %v157_v17 = vadd.f32 %v181_v13, %v148_v16  ;;  %160 = vst.msk [vmem:[#allocation8 + $0x8] sm:$0xff] %vm47_vm0, %v158_v15 }
  0xf4   :  { %159 = vst.msk [vmem:[#allocation8] sm:$0xff] %vm47_vm0, %v157_v17 }
  0xf5   :  { %256 = shalt.err (!%p253_p0)
}
  0xf6   :  { %172 = dma.vmem_to_hbm [thread:$0]  %s167_s25, 256, %s329_s3, [#allocation5], %s272_s15, %s272_s15, %s273_s16  }
  0xf7   :  { %269 = dma.done.wait [#allocation5], 256  }
  0xf8   :  { %270 = vsyncadd [#allocation5], 4294967040 }
  0xf9   :  { %176 = vsyncpa [#allocation4], 1 }
  0xfa   :  { %177 = vsyncpa [#allocation7], 1 }
  0xfb   :  { %178 = vsyncpa [#allocation5], 1 }

</bundles_post_ra>
